<compile_context>
chip_gen: v6e
topology: v6e:2x2x1
jax: 0.10.0
libtpu: 0.0.40
codegen_flags: <defaults>
</compile_context>

<pallas_src>
import jax
import jax.numpy as jnp
from jax import lax
from jax.experimental import pallas as pl
from jax.experimental.pallas import tpu as pltpu

LANE = 128                       # TPU lane width
BN_EPS = 1e-5
TM_TARGET = 512                  # rows per tile (multiple of 256 / 128)
# Tiles here are small; raise (v6e, 128 MiB physical) or budget <= ~48 MiB
# (v7x, 64 MiB physical) if tiles are enlarged.
VMEM_LIMIT = 32 * 1024 * 1024


def _round_up(x, m):
    return (x + m - 1) // m * m


# ---------------------------------------------------------------------------
# Kernel 1: fused conv3x3/s2/p1 (as one K=9*cin matmul) + ReLU + BN partial sums
# ---------------------------------------------------------------------------
def _conv_relu_stats_kernel(lhs_ref, w_ref, y_ref, su_ref, sq_ref):
    # lhs_ref: (tm, Kp) bf16 im2col rows     w_ref: (Kp, cp) bf16 (resident)
    # y_ref  : (tm, cp) bf16 relu(conv)      su/sq: (1, 1, cp) f32 partial sums
    acc = jnp.dot(lhs_ref[...], w_ref[...], preferred_element_type=jnp.float32)
    y = jnp.maximum(acc, 0.0)                 # ReLU before BN (spec order)
    yb = y.astype(y_ref.dtype)                # bf16 activation storage
    y_ref[...] = yb
    yf = yb.astype(jnp.float32)               # stats consistent with stored y
    su_ref[0] = jnp.sum(yf, axis=0, keepdims=True)
    sq_ref[0] = jnp.sum(yf * yf, axis=0, keepdims=True)


def conv_relu_stats(lhs, w_mat, tm, cp):
    Mp, Kp = lhs.shape
    T = Mp // tm
    return pl.pallas_call(
        _conv_relu_stats_kernel,
        out_shape=(jax.ShapeDtypeStruct((Mp, cp), jnp.bfloat16),
                   jax.ShapeDtypeStruct((T, 1, cp), jnp.float32),
                   jax.ShapeDtypeStruct((T, 1, cp), jnp.float32)),
        grid=(T,),
        in_specs=[
            pl.BlockSpec((tm, Kp), lambda t: (t, 0)),
            pl.BlockSpec((Kp, cp), lambda t: (0, 0)),      # weights resident
        ],
        out_specs=(
            pl.BlockSpec((tm, cp), lambda t: (t, 0)),
            pl.BlockSpec((1, 1, cp), lambda t: (t, 0, 0)),
            pl.BlockSpec((1, 1, cp), lambda t: (t, 0, 0)),
        ),
        compiler_params=pltpu.CompilerParams(
            dimension_semantics=("parallel",),
            vmem_limit_bytes=VMEM_LIMIT),
    )(lhs, w_mat)


# ---------------------------------------------------------------------------
# Kernel 2: streaming BatchNorm apply, o = y * scale + shift
# ---------------------------------------------------------------------------
def _bn_apply_kernel(y_ref, scale_ref, shift_ref, o_ref):
    # y_ref: (tm, cp) bf16   scale/shift: (1, cp) f32 (resident)   o: (tm, cp) f32
    o_ref[...] = y_ref[...].astype(jnp.float32) * scale_ref[...] + shift_ref[...]


def bn_apply(y, scale, shift, tm):
    Mp, cp = y.shape
    T = Mp // tm
    return pl.pallas_call(
        _bn_apply_kernel,
        out_shape=jax.ShapeDtypeStruct((Mp, cp), jnp.float32),
        grid=(T,),
        in_specs=[
            pl.BlockSpec((tm, cp), lambda t: (t, 0)),
            pl.BlockSpec((1, cp), lambda t: (0, 0)),       # scale resident
            pl.BlockSpec((1, cp), lambda t: (0, 0)),       # shift resident
        ],
        out_specs=pl.BlockSpec((tm, cp), lambda t: (t, 0)),
        compiler_params=pltpu.CompilerParams(
            dimension_semantics=("parallel",),
            vmem_limit_bytes=VMEM_LIMIT),
    )(y, scale, shift)


# ---------------------------------------------------------------------------
# BnLayer forward: relu(conv(x)) -> BatchNorm2d (training-mode batch stats)
# ---------------------------------------------------------------------------
def bn_layer_forward(x_nchw, w, gamma, beta, eps=BN_EPS):
    N, cin, H, W = x_nchw.shape
    kh_, kw_, wcin, cout = w.shape
    assert (kh_, kw_) == (3, 3) and wcin == cin

    Ho = (H + 2 - 3) // 2 + 1                 # stride 2, pad 1, k 3
    Wo = (W + 2 - 3) // 2 + 1
    M = N * Ho * Wo                           # matmul rows
    K = 9 * cin
    Kp = _round_up(K, LANE)                   # lane-dense contraction dim
    cp = _round_up(cout, LANE)                # lane-dense output channels
    tm = min(TM_TARGET, _round_up(M, 16))     # row tile (>=16 for bf16 packing)
    Mp = _round_up(M, tm)
    # NOTE(v7x): for large problems keep Mp/tm >= ~8-16 so each of the two
    # TensorCores still gets several pipelined grid steps.

    # --- layout prep (bf16 throughout; one K<=128-lane-wide im2col slab) -----
    xb = x_nchw.astype(jnp.bfloat16)
    x_nhwc = jnp.transpose(xb, (0, 2, 3, 1))                        # (N,H,W,cin)
    xpad = jnp.pad(x_nhwc, ((0, 0), (1, 1), (1, 1), (0, 0)))        # (N,H+2,W+2,cin)
    # tap (kh,kw) at output (ho,wo) reads xpad[2*ho+kh, 2*wo+kw]; K order matches
    # w.reshape(9*cin, cout): column = (3*kh+kw)*cin + c.
    taps = [xpad[:, kh:kh + 2 * Ho:2, kw:kw + 2 * Wo:2, :]
            for kh in range(3) for kw in range(3)]                  # (N,Ho,Wo,cin) each
    lhs = jnp.concatenate(taps, axis=-1).reshape(M, K)              # (M, 9*cin)
    # Zero-pad rows/lanes: padded rows give conv=0 -> relu=0 -> contribute 0 to
    # both partial sums, so dividing by the true M keeps batch stats exact.
    lhs = jnp.pad(lhs, ((0, Mp - M), (0, Kp - K)))

    w_mat = (jnp.zeros((Kp, cp), jnp.float32)
             .at[:K, :cout].set(w.reshape(K, cout))
             .astype(jnp.bfloat16))

    # --- pass 1: conv + ReLU + per-tile partial sums -------------------------
    y, su, sq = conv_relu_stats(lhs, w_mat, tm, cp)

    # --- hoisted batch-stat reduction (tiny: T x cp) --------------------------
    inv_m = 1.0 / float(M)
    mean = jnp.sum(su, axis=0) * inv_m                               # (1, cp)
    ex2 = jnp.sum(sq, axis=0) * inv_m
    var = jnp.maximum(ex2 - mean * mean, 0.0)                        # biased var
    gamma_p = jnp.zeros((1, cp), jnp.float32).at[0, :cout].set(gamma)
    beta_p = jnp.zeros((1, cp), jnp.float32).at[0, :cout].set(beta)
    inv_std = lax.rsqrt(var + eps)
    scale = gamma_p * inv_std                                        # 0 on padded chans
    shift = beta_p - mean * scale

    # --- pass 2: streaming scale + shift --------------------------------------
    o = bn_apply(y, scale, shift, tm)

    out = o[:M, :cout].reshape(N, Ho, Wo, cout)
    return jnp.transpose(out, (0, 3, 1, 2))                          # NCHW


# ---------------------------------------------------------------------------
# Pure-JAX reference (mirrors the kernel's bf16 operand + activation storage)
# ---------------------------------------------------------------------------
def _reference_forward(x_nchw, w, gamma, beta, eps):
    xb = x_nchw.astype(jnp.bfloat16).astype(jnp.float32)
    wb = w.astype(jnp.bfloat16).astype(jnp.float32)
    y = lax.conv_general_dilated(
        xb, wb, window_strides=(2, 2), padding=((1, 1), (1, 1)),
        dimension_numbers=("NCHW", "HWIO", "NCHW"))
    y = jnp.maximum(y, 0.0)
    y = y.astype(jnp.bfloat16).astype(jnp.float32)   # bf16 activation storage
    mean = jnp.mean(y, axis=(0, 2, 3), keepdims=True)
    var = jnp.mean(jnp.square(y - mean), axis=(0, 2, 3), keepdims=True)
    g = gamma.reshape(1, -1, 1, 1)
    b = beta.reshape(1, -1, 1, 1)
    return g * (y - mean) * lax.rsqrt(var + eps) + b


if __name__ == "__main__":
    key = jax.random.PRNGKey(0)
    k_x, k_w, k_g, k_b = jax.random.split(key, 4)

    # BnLayer(ni=4, nf=8, stride=2, kernel_size=3) on a (2, 4, 16, 16) input.
    N, cin, H, W = 2, 4, 16, 16
    cout = 8

    x = jax.random.normal(k_x, (N, cin, H, W), dtype=jnp.float32)
    w = 0.1 * jax.random.normal(k_w, (3, 3, cin, cout), dtype=jnp.float32)  # HWIO
    gamma = 1.0 + 0.1 * jax.random.normal(k_g, (cout,), dtype=jnp.float32)
    beta = 0.1 * jax.random.normal(k_b, (cout,), dtype=jnp.float32)

    fwd = jax.jit(bn_layer_forward)
    out = fwd(x, w, gamma, beta)
    jax.block_until_ready(out)

    assert out.shape == (N, cout, H // 2, W // 2), out.shape

    ref = _reference_forward(x, w, gamma, beta, BN_EPS)
    err = float(jnp.max(jnp.abs(out - ref)))
    assert err < 5e-3, f"max abs error vs reference: {err}"

    print("KERNEL_OK")
</pallas_src>

<mosaic_0001>
module attributes {stable_mosaic.version = 11 : i64} {
  func.func @_conv_relu_stats_kernel(%arg0: i32, %arg1: memref<128x128xbf16, #tpu.memory_space<vmem>>, %arg2: memref<128x128xbf16, #tpu.memory_space<vmem>>, %arg3: memref<128x128xbf16, #tpu.memory_space<vmem>>, %arg4: memref<1x1x128xf32, #tpu.memory_space<vmem>>, %arg5: memref<1x1x128xf32, #tpu.memory_space<vmem>>) attributes {dimension_semantics = [#tpu.dimension_semantics<parallel>], iteration_bounds = array<i64: 1>, scalar_prefetch = 0 : i64, scratch_operands = 0 : i64, tpu.core_type = #tpu.core_type<tc>, window_params = [{transform_indices = @transform_0, window_bounds = array<i64: 128, 128>}, {pipeline_mode = #tpu.pipeline_mode<synchronous>, transform_indices = @transform_1, window_bounds = array<i64: 128, 128>}, {transform_indices = @transform_2, window_bounds = array<i64: 128, 128>}, {transform_indices = @transform_3, window_bounds = array<i64: 1, 1, 128>}, {transform_indices = @transform_4, window_bounds = array<i64: 1, 1, 128>}]} {
    %c0 = arith.constant 0 : index
    %c0_0 = arith.constant 0 : index
    %0 = vector.load %arg1[%c0, %c0_0] : memref<128x128xbf16, #tpu.memory_space<vmem>>, vector<128x128xbf16>
    %c0_1 = arith.constant 0 : index
    %c0_2 = arith.constant 0 : index
    %1 = vector.load %arg2[%c0_1, %c0_2] : memref<128x128xbf16, #tpu.memory_space<vmem>>, vector<128x128xbf16>
    %cst = arith.constant dense<0.000000e+00> : vector<128x128xf32>
    %2 = tpu.matmul %0, %1, %cst {dimension_numbers = #tpu.dot_dimension_numbers<[1], [0], [0], [1], [0, 0, 1, 1], [], []>} : vector<128x128xbf16>, vector<128x128xbf16>, vector<128x128xf32> -> vector<128x128xf32>
    %cst_3 = arith.constant 0.000000e+00 : f32
    %3 = vector.broadcast %cst_3 : f32 to vector<128x128xf32>
    %4 = arith.maximumf %2, %3 : vector<128x128xf32>
    %5 = arith.truncf %4 : vector<128x128xf32> to vector<128x128xbf16>
    %c0_4 = arith.constant 0 : index
    %c0_5 = arith.constant 0 : index
    %6 = vector.load %arg3[%c0_4, %c0_5] : memref<128x128xbf16, #tpu.memory_space<vmem>>, vector<128x128xbf16>
    tpu.vector_store %arg3[%c0_4, %c0_5], %5 {strides = array<i32>} : memref<128x128xbf16, #tpu.memory_space<vmem>>, vector<128x128xbf16>,
    %7 = arith.extf %5 : vector<128x128xbf16> to vector<128x128xf32>
    %cst_6 = arith.constant dense<0.000000e+00> : vector<128xf32>
    %8 = vector.multi_reduction <add>, %7, %cst_6 [0] : vector<128x128xf32> to vector<128xf32>
    %9 = vector.shape_cast %8 : vector<128xf32> to vector<1x128xf32>
    %c0_7 = arith.constant 0 : index
    %c0_8 = arith.constant 0 : index
    %c0_9 = arith.constant 0 : index
    %10 = vector.load %arg4[%c0_7, %c0_8, %c0_9] : memref<1x1x128xf32, #tpu.memory_space<vmem>>, vector<1x1x128xf32>
    %11 = vector.shape_cast %10 : vector<1x1x128xf32> to vector<1x128xf32>
    %12 = vector.shape_cast %9 : vector<1x128xf32> to vector<1x1x128xf32>
    tpu.vector_store %arg4[%c0_7, %c0_8, %c0_9], %12 {strides = array<i32>} : memref<1x1x128xf32, #tpu.memory_space<vmem>>, vector<1x1x128xf32>,
    %13 = arith.mulf %7, %7 : vector<128x128xf32>
    %cst_10 = arith.constant dense<0.000000e+00> : vector<128xf32>
    %14 = vector.multi_reduction <add>, %13, %cst_10 [0] : vector<128x128xf32> to vector<128xf32>
    %15 = vector.shape_cast %14 : vector<128xf32> to vector<1x128xf32>
    %c0_11 = arith.constant 0 : index
    %c0_12 = arith.constant 0 : index
    %c0_13 = arith.constant 0 : index
    %16 = vector.load %arg5[%c0_11, %c0_12, %c0_13] : memref<1x1x128xf32, #tpu.memory_space<vmem>>, vector<1x1x128xf32>
    %17 = vector.shape_cast %16 : vector<1x1x128xf32> to vector<1x128xf32>
    %18 = vector.shape_cast %15 : vector<1x128xf32> to vector<1x1x128xf32>
    tpu.vector_store %arg5[%c0_11, %c0_12, %c0_13], %18 {strides = array<i32>} : memref<1x1x128xf32, #tpu.memory_space<vmem>>, vector<1x1x128xf32>,
    return
  }
  func.func @transform_0(%arg0: i32) -> (i32, i32) {
    %c0_i32 = arith.constant 0 : i32
    %c0_i32_0 = arith.constant 0 : i32
    return %arg0, %c0_i32 : i32, i32
  }
  func.func @transform_1(%arg0: i32) -> (i32, i32) {
    %c0_i32 = arith.constant 0 : i32
    %c0_i32_0 = arith.constant 0 : i32
    %c0_i32_1 = arith.constant 0 : i32
    return %c0_i32, %c0_i32_0 : i32, i32
  }
  func.func @transform_2(%arg0: i32) -> (i32, i32) {
    %c0_i32 = arith.constant 0 : i32
    %c0_i32_0 = arith.constant 0 : i32
    return %arg0, %c0_i32 : i32, i32
  }
  func.func @transform_3(%arg0: i32) -> (i32, i32, i32) {
    %c0_i32 = arith.constant 0 : i32
    %c0_i32_0 = arith.constant 0 : i32
    %c0_i32_1 = arith.constant 0 : i32
    return %arg0, %c0_i32, %c0_i32_0 : i32, i32, i32
  }
  func.func @transform_4(%arg0: i32) -> (i32, i32, i32) {
    %c0_i32 = arith.constant 0 : i32
    %c0_i32_0 = arith.constant 0 : i32
    %c0_i32_1 = arith.constant 0 : i32
    return %arg0, %c0_i32, %c0_i32_0 : i32, i32, i32
  }
}

module attributes {stable_mosaic.version = 11 : i64} {
  func.func @_bn_apply_kernel(%arg0: i32, %arg1: memref<128x128xbf16, #tpu.memory_space<vmem>>, %arg2: memref<1x128xf32, #tpu.memory_space<vmem>>, %arg3: memref<1x128xf32, #tpu.memory_space<vmem>>, %arg4: memref<128x128xf32, #tpu.memory_space<vmem>>) attributes {dimension_semantics = [#tpu.dimension_semantics<parallel>], iteration_bounds = array<i64: 1>, scalar_prefetch = 0 : i64, scratch_operands = 0 : i64, tpu.core_type = #tpu.core_type<tc>, window_params = [{transform_indices = @transform_0, window_bounds = array<i64: 128, 128>}, {pipeline_mode = #tpu.pipeline_mode<synchronous>, transform_indices = @transform_1, window_bounds = array<i64: 1, 128>}, {pipeline_mode = #tpu.pipeline_mode<synchronous>, transform_indices = @transform_2, window_bounds = array<i64: 1, 128>}, {transform_indices = @transform_3, window_bounds = array<i64: 128, 128>}]} {
    %c0 = arith.constant 0 : index
    %c0_0 = arith.constant 0 : index
    %0 = vector.load %arg1[%c0, %c0_0] : memref<128x128xbf16, #tpu.memory_space<vmem>>, vector<128x128xbf16>
    %1 = arith.extf %0 : vector<128x128xbf16> to vector<128x128xf32>
    %c0_1 = arith.constant 0 : index
    %c0_2 = arith.constant 0 : index
    %2 = vector.load %arg2[%c0_1, %c0_2] : memref<1x128xf32, #tpu.memory_space<vmem>>, vector<1x128xf32>
    %3 = vector.broadcast %2 : vector<1x128xf32> to vector<128x128xf32>
    %4 = arith.mulf %1, %3 : vector<128x128xf32>
    %c0_3 = arith.constant 0 : index
    %c0_4 = arith.constant 0 : index
    %5 = vector.load %arg3[%c0_3, %c0_4] : memref<1x128xf32, #tpu.memory_space<vmem>>, vector<1x128xf32>
    %6 = vector.broadcast %5 : vector<1x128xf32> to vector<128x128xf32>
    %7 = arith.addf %4, %6 : vector<128x128xf32>
    %c0_5 = arith.constant 0 : index
    %c0_6 = arith.constant 0 : index
    %8 = vector.load %arg4[%c0_5, %c0_6] : memref<128x128xf32, #tpu.memory_space<vmem>>, vector<128x128xf32>
    tpu.vector_store %arg4[%c0_5, %c0_6], %7 {strides = array<i32>} : memref<128x128xf32, #tpu.memory_space<vmem>>, vector<128x128xf32>,
    return
  }
  func.func @transform_0(%arg0: i32) -> (i32, i32) {
    %c0_i32 = arith.constant 0 : i32
    %c0_i32_0 = arith.constant 0 : i32
    return %arg0, %c0_i32 : i32, i32
  }
  func.func @transform_1(%arg0: i32) -> (i32, i32) {
    %c0_i32 = arith.constant 0 : i32
    %c0_i32_0 = arith.constant 0 : i32
    %c0_i32_1 = arith.constant 0 : i32
    return %c0_i32, %c0_i32_0 : i32, i32
  }
  func.func @transform_2(%arg0: i32) -> (i32, i32) {
    %c0_i32 = arith.constant 0 : i32
    %c0_i32_0 = arith.constant 0 : i32
    %c0_i32_1 = arith.constant 0 : i32
    return %c0_i32, %c0_i32_0 : i32, i32
  }
  func.func @transform_3(%arg0: i32) -> (i32, i32) {
    %c0_i32 = arith.constant 0 : i32
    %c0_i32_0 = arith.constant 0 : i32
    return %arg0, %c0_i32 : i32, i32
  }
}

</mosaic_0001>

<bundles_post_ra>
// kernel: bn_layer_forward.3
= control target key start
LH: loop header
LB: loop body
LE: loop exit
PB: predicated region body
PF: predicated region fallthrough
CT: control target
= control target key end

     0   :  { %s251_s0 = inlined_call_operand.vmem [shape: bf16[128,128], index: 0, kind: input, shape index: {}]   ;;  %s252_s1 = inlined_call_operand.vmem [shape: f32[1,128], index: 1, kind: input, shape index: {}]   ;;  %s253_s2 = inlined_call_operand.vmem [shape: f32[1,128], index: 2, kind: input, shape index: {}]   ;;  %s254_s3 = inlined_call_operand.vmem [shape: f32[128,128], index: 3, kind: output, shape index: {}]  }
   0x1   :  { %v115_v0 = vld [vmem:[%s251_s0] sm:$0xff]   ;;  %v146_v4 = vld [vmem:[%s251_s0 + $0x8] sm:$0xff]   ;;  %v147_v5 = vld [vmem:[%s251_s0 + $0x10] sm:$0xff]  }
   0x2   :  { %v112_v1 = vld [vmem:[%s252_s1] ss:$0 sm:$0xff]  ;;  %v116_v2 = vunpack.c.l.bf16 %v115_v0  ;;  %v117_v3 = vunpack.c.h.bf16 %v115_v0  ;;  %v148_v6 = vld [vmem:[%s251_s0 + $0x18] sm:$0xff]   ;;  %v120_v8 = vunpack.c.l.bf16 %v146_v4  ;;  %v121_v9 = vunpack.c.h.bf16 %v146_v4  ;;  %v150_v25 = vld [vmem:[%s251_s0 + $0x28] sm:$0xff]  }
   0x3   :  { %v113_v7 = vld [vmem:[%s253_s2] ss:$0 sm:$0xff]  ;;  %v124_v10 = vunpack.c.l.bf16 %v147_v5  ;;  %v125_v11 = vunpack.c.h.bf16 %v147_v5  ;;  %v128_v14 = vunpack.c.l.bf16 %v148_v6  ;;  %v129_v15 = vunpack.c.h.bf16 %v148_v6  ;;  %v151_v26 = vld [vmem:[%s251_s0 + $0x30] sm:$0xff]   ;;  %v152_v31 = vld [vmem:[%s251_s0 + $0x38] sm:$0xff]  }
   0x4   :  { %v53_v12 = vmul.f32 %v116_v2, %v112_v1  ;;  %v54_v13 = vmul.f32 %v117_v3, %v112_v1  ;;  %v55_v16 = vmul.f32 %v120_v8, %v112_v1  ;;  %v56_v17 = vmul.f32 %v121_v9, %v112_v1  ;;  %v149_v20 = vld [vmem:[%s251_s0 + $0x20] sm:$0xff]  }
   0x5   :  { %v57_v18 = vmul.f32 %v124_v10, %v112_v1  ;;  %v58_v19 = vmul.f32 %v125_v11, %v112_v1  ;;  %v59_v23 = vmul.f32 %v128_v14, %v112_v1  ;;  %v60_v24 = vmul.f32 %v129_v15, %v112_v1 }
   0x6   :  { %v76_v21 = vadd.f32 %v113_v7, %v53_v12  ;;  %v77_v22 = vadd.f32 %v113_v7, %v54_v13  ;;  %v78_v27 = vadd.f32 %v113_v7, %v55_v16  ;;  %v79_v28 = vadd.f32 %v113_v7, %v56_v17 }
   0x7   :  { %v80_v29 = vadd.f32 %v113_v7, %v57_v18  ;;  %v81_v30 = vadd.f32 %v113_v7, %v58_v19  ;;  %v82_v32 = vadd.f32 %v113_v7, %v59_v23  ;;  %v83_v33 = vadd.f32 %v113_v7, %v60_v24 }
   0x8   :  { %92 = vst [vmem:[%s254_s3] sm:$0xff] %v76_v21  ;;  %93 = vst [vmem:[%s254_s3 + $0x8] sm:$0xff] %v77_v22  ;;  %v132_v34 = vunpack.c.l.bf16 %v149_v20  ;;  %v133_v35 = vunpack.c.h.bf16 %v149_v20  ;;  %v136_v36 = vunpack.c.l.bf16 %v150_v25  ;;  %v137_v37 = vunpack.c.h.bf16 %v150_v25 }
   0x9   :  { %94 = vst [vmem:[%s254_s3 + $0x10] sm:$0xff] %v78_v27  ;;  %95 = vst [vmem:[%s254_s3 + $0x18] sm:$0xff] %v79_v28  ;;  %v140_v38 = vunpack.c.l.bf16 %v151_v26  ;;  %v141_v39 = vunpack.c.h.bf16 %v151_v26  ;;  %v144_v42 = vunpack.c.l.bf16 %v152_v31  ;;  %v145_v43 = vunpack.c.h.bf16 %v152_v31 }
   0xa   :  { %96 = vst [vmem:[%s254_s3 + $0x20] sm:$0xff] %v80_v29  ;;  %97 = vst [vmem:[%s254_s3 + $0x28] sm:$0xff] %v81_v30  ;;  %v61_v40 = vmul.f32 %v132_v34, %v112_v1  ;;  %v62_v41 = vmul.f32 %v133_v35, %v112_v1  ;;  %v63_v44 = vmul.f32 %v136_v36, %v112_v1 }
   0xb   :  { %98 = vst [vmem:[%s254_s3 + $0x30] sm:$0xff] %v82_v32  ;;  %99 = vst [vmem:[%s254_s3 + $0x38] sm:$0xff] %v83_v33  ;;  %v64_v45 = vmul.f32 %v137_v37, %v112_v1  ;;  %v65_v46 = vmul.f32 %v140_v38, %v112_v1  ;;  %v66_v47 = vmul.f32 %v141_v39, %v112_v1 }
   0xc   :  { %v84_v48 = vadd.f32 %v113_v7, %v61_v40  ;;  %v85_v49 = vadd.f32 %v113_v7, %v62_v41  ;;  %v67_v50 = vmul.f32 %v144_v42, %v112_v1  ;;  %v68_v51 = vmul.f32 %v145_v43, %v112_v1 }
   0xd   :  { %v86_v52 = vadd.f32 %v113_v7, %v63_v44  ;;  %v87_v53 = vadd.f32 %v113_v7, %v64_v45  ;;  %v88_v54 = vadd.f32 %v113_v7, %v65_v46  ;;  %v89_v55 = vadd.f32 %v113_v7, %v66_v47 }
   0xe   :  { %100 = vst [vmem:[%s254_s3 + $0x40] sm:$0xff] %v84_v48  ;;  %101 = vst [vmem:[%s254_s3 + $0x48] sm:$0xff] %v85_v49  ;;  %v90_v56 = vadd.f32 %v113_v7, %v67_v50  ;;  %v91_v57 = vadd.f32 %v113_v7, %v68_v51 }
   0xf   :  { %102 = vst [vmem:[%s254_s3 + $0x50] sm:$0xff] %v86_v52  ;;  %103 = vst [vmem:[%s254_s3 + $0x58] sm:$0xff] %v87_v53 }
  0x10   :  { %104 = vst [vmem:[%s254_s3 + $0x60] sm:$0xff] %v88_v54  ;;  %105 = vst [vmem:[%s254_s3 + $0x68] sm:$0xff] %v89_v55 }
  0x11   :  { %106 = vst [vmem:[%s254_s3 + $0x70] sm:$0xff] %v90_v56  ;;  %107 = vst [vmem:[%s254_s3 + $0x78] sm:$0xff] %v91_v57 }

// kernel: bn_layer_forward.2
= control target key start
LH: loop header
LB: loop body
LE: loop exit
PB: predicated region body
PF: predicated region fallthrough
CT: control target
= control target key end

     0   :  { %s707_s1 = inlined_call_operand.vmem [shape: bf16[128,128], index: 1, kind: input, shape index: {}]   ;;  %s708_s0 = inlined_call_operand.vmem [shape: bf16[128,128], index: 0, kind: input, shape index: {}]   ;;  %s709_s2 = inlined_call_operand.vmem [shape: bf16[128,128], index: 2, kind: output, shape index: {0}]   ;;  %s710_s3 = inlined_call_operand.vmem [shape: f32[1,1,128], index: 3, kind: output, shape index: {1}]   ;;  %s711_s4 = inlined_call_operand.vmem [shape: f32[1,1,128], index: 4, kind: output, shape index: {2}]  }
   0x1   :  { %v583_v0 = vld [vmem:[%s707_s1 + $0x38] sm:$0xff]   ;;  %v584_v1 = vld [vmem:[%s707_s1 + $0x30] sm:$0xff]   ;;  %v585_v2 = vld [vmem:[%s707_s1 + $0x28] sm:$0xff]  }
   0x2   :  { %535 = vmatprep.subr.bf16.mxu0 %v583_v0  ;;  %567 = vmatprep.subr.bf16.mxu1 %v583_v0  ;;  %v586_v3 = vld [vmem:[%s707_s1 + $0x20] sm:$0xff]   ;;  %v587_v5 = vld [vmem:[%s707_s1 + $0x18] sm:$0xff]   ;;  %v588_v7 = vld [vmem:[%s707_s1 + $0x10] sm:$0xff]  }
   0x3   :  { %536 = vmatpush3.bf16.msra.mxu0 %v583_v0  ;;  %575 = vmatpush3.bf16.msra.mxu1 %v583_v0  ;;  %v591_v4 = vld [vmem:[%s708_s0] sm:$0xff]   ;;  %v589_v8 = vld [vmem:[%s707_s1 + $0x8] sm:$0xff]   ;;  %v593_v12 = vld [vmem:[%s708_s0 + $0x10] sm:$0xff]  }
   0x4   :  { %537 = vmatprep.subr.bf16.mxu0 %v584_v1  ;;  %568 = vmatprep.subr.bf16.mxu1 %v584_v1  ;;  %v595_v6 = vld [vmem:[%s708_s0 + $0x20] sm:$0xff]   ;;  %v592_v10 = vld [vmem:[%s708_s0 + $0x8] sm:$0xff]   ;;  %v597_v13 = vld [vmem:[%s708_s0 + $0x30] sm:$0xff]  }
   0x5   :  { %551 = vmatprep.mubr.bf16.mxu0 %v591_v4  ;;  %559 = vmatprep.mubr.bf16.mxu1 %v595_v6  ;;  %v590_v9 = vld [vmem:[%s707_s1] sm:$0xff]   ;;  %v596_v11 = vld [vmem:[%s708_s0 + $0x28] sm:$0xff]   ;;  %v594_v14 = vld [vmem:[%s708_s0 + $0x18] sm:$0xff]  }
   0x6   :  { %v598_v15 = vld [vmem:[%s708_s0 + $0x38] sm:$0xff]  }
   0x7   :  { %538 = vmatpush3.bf16.msra.mxu0 %v584_v1  ;;  %576 = vmatpush3.bf16.msra.mxu1 %v584_v1 }
   0x8   :  { %539 = vmatprep.subr.bf16.mxu0 %v585_v2  ;;  %569 = vmatprep.subr.bf16.mxu1 %v585_v2 }
   0xb   :  { %540 = vmatpush3.bf16.msra.mxu0 %v585_v2  ;;  %577 = vmatpush3.bf16.msra.mxu1 %v585_v2 }
   0xc   :  { %541 = vmatprep.subr.bf16.mxu0 %v586_v3  ;;  %570 = vmatprep.subr.bf16.mxu1 %v586_v3 }
   0xf   :  { %542 = vmatpush3.bf16.msra.mxu0 %v586_v3  ;;  %578 = vmatpush3.bf16.msra.mxu1 %v586_v3 }
  0x10   :  { %543 = vmatprep.subr.bf16.mxu0 %v587_v5  ;;  %571 = vmatprep.subr.bf16.mxu1 %v587_v5 }
  0x13   :  { %544 = vmatpush3.bf16.msra.mxu0 %v587_v5  ;;  %579 = vmatpush3.bf16.msra.mxu1 %v587_v5 }
  0x14   :  { %545 = vmatprep.subr.bf16.mxu0 %v588_v7  ;;  %572 = vmatprep.subr.bf16.mxu1 %v588_v7 }
  0x17   :  { %546 = vmatpush3.bf16.msra.mxu0 %v588_v7  ;;  %580 = vmatpush3.bf16.msra.mxu1 %v588_v7 }
  0x18   :  { %547 = vmatprep.subr.bf16.mxu0 %v589_v8  ;;  %573 = vmatprep.subr.bf16.mxu1 %v589_v8 }
  0x1b   :  { %548 = vmatpush3.bf16.msra.mxu0 %v589_v8  ;;  %581 = vmatpush3.bf16.msra.mxu1 %v589_v8 }
  0x1c   :  { %549 = vmatprep.subr.bf16.mxu0 %v590_v9  ;;  %574 = vmatprep.subr.bf16.mxu1 %v590_v9 }
  0x1f   :  { %550 = vmatpush3.bf16.msra.mxu0 %v590_v9  ;;  %582 = vmatpush3.bf16.msra.mxu1 %v590_v9 }
  0x22   :  { %552 = vmatmul.mubr.bf16.vlgmr.msra.gmra.mxu0 %v592_v10  ;;  %560 = vmatmul.mubr.bf16.vlgmr.msra.gmra.mxu1 %v596_v11 }
  0x23   :  { %555 = vmatprep.mubr.bf16.mxu0 %v593_v12  ;;  %563 = vmatprep.mubr.bf16.mxu1 %v597_v13 }
  0x2a   :  { %556 = vmatmul.mubr.bf16.gmra.mxu0 %v594_v14  ;;  %564 = vmatmul.mubr.bf16.gmra.mxu1 %v598_v15 }
  0xe2   :  { %v553_v16 = vpop.f32.mrf.mxu0  ;;  %v561_v17 = vpop.f32.mrf.mxu1 }
  0xe3   :  { %v250_v20 = vmax.f32 %v561_v17, 0.0  ;;  %v242_v23 = vmax.f32 %v553_v16, 0.0 }
  0xe4   :  { %v177_v18 = vpop.f32.mrf.mxu0  ;;  %v209_v19 = vpop.f32.mrf.mxu1 }
  0xe5   :  { %v240_v26 = vmax.f32 %v177_v18, 0.0  ;;  %v248_v28 = vmax.f32 %v209_v19, 0.0 }
  0xe6   :  { %v554_v21 = vpop.f32.mrf.mxu0  ;;  %v562_v22 = vpop.f32.mrf.mxu1 }
  0xe7   :  { %v243_v24 = vmax.f32 %v554_v21, 0.0  ;;  %v251_v25 = vmax.f32 %v562_v22, 0.0 }
  0xe8   :  { %v180_v27 = vpop.f32.mrf.mxu0  ;;  %v212_v29 = vpop.f32.mrf.mxu1 }
  0xe9   :  { %v257_v30 = vpack.c.bf16 %v243_v24, %v242_v23  ;;  %v241_v31 = vmax.f32 %v180_v27, 0.0  ;;  %v672_v32 = vpack.c.bf16 %v251_v25, %v250_v20  ;;  %v249_v33 = vmax.f32 %v212_v29, 0.0 }
  0xea   :  { %v557_v34 = vpop.f32.mrf.mxu0  ;;  %v565_v35 = vpop.f32.mrf.mxu1 }
  0xeb   :  { %512 = vst [vmem:[%s709_s2 + $0x8] sm:$0xff] %v257_v30   ;;  %v256_v36 = vpack.c.bf16 %v241_v31, %v240_v26  ;;  %516 = vst [vmem:[%s709_s2 + $0x28] sm:$0xff] %v672_v32   ;;  %v338_v37 = vunpack.c.l.bf16 %v257_v30  ;;  %v260_v39 = vpack.c.bf16 %v249_v33, %v248_v28  ;;  %v339_v43 = vunpack.c.h.bf16 %v257_v30 }
  0xec   :  { %v193_v38 = vpop.f32.mrf.mxu0  ;;  %v225_v40 = vpop.f32.mrf.mxu1  ;;  %v246_v44 = vmax.f32 %v557_v34, 0.0  ;;  %v254_v46 = vmax.f32 %v565_v35, 0.0  ;;  %v346_v23 = vunpack.c.l.bf16 %v672_v32  ;;  %v347_v27 = vunpack.c.h.bf16 %v672_v32 }
  0xed   :  { %476 = vst [vmem:[%s709_s2] sm:$0xff] %v256_v36   ;;  %v336_v41 = vunpack.c.l.bf16 %v256_v36  ;;  %v337_v42 = vunpack.c.h.bf16 %v256_v36  ;;  %515 = vst [vmem:[%s709_s2 + $0x20] sm:$0xff] %v260_v39   ;;  %v376_v52 = vmul.f32 %v338_v37, %v338_v37  ;;  %v244_v53 = vmax.f32 %v193_v38, 0.0 }
  0xee   :  { %v558_v45 = vpop.f32.mrf.mxu0  ;;  %v566_v47 = vpop.f32.mrf.mxu1  ;;  %v252_v55 = vmax.f32 %v225_v40, 0.0  ;;  %v377_v3 = vmul.f32 %v339_v43, %v339_v43  ;;  %v344_v18 = vunpack.c.l.bf16 %v260_v39  ;;  %v345_v21 = vunpack.c.h.bf16 %v260_v39 }
  0xef   :  { %v352_v48 = vadd.f32 %v337_v42, %v336_v41  ;;  %v374_v49 = vmul.f32 %v336_v41, %v336_v41  ;;  %v375_v50 = vmul.f32 %v337_v42, %v337_v42  ;;  %v247_v51 = vmax.f32 %v558_v45, 0.0 }
  0xf0   :  { %v196_v54 = vpop.f32.mrf.mxu0  ;;  %v255_v56 = vmax.f32 %v566_v47, 0.0  ;;  %v228_v57 = vpop.f32.mrf.mxu1  ;;  %v382_v25 = vmul.f32 %v344_v18, %v344_v18  ;;  %v383_v29 = vmul.f32 %v345_v21, %v345_v21  ;;  %v384_v31 = vmul.f32 %v346_v23, %v346_v23 }
  0xf1   :  { %v353_v58 = vadd.f32 %v352_v48, %v338_v37  ;;  %v390_v59 = vadd.f32 %v375_v50, %v374_v49  ;;  %v259_v60 = vpack.c.bf16 %v247_v51, %v246_v44  ;;  %v245_v61 = vmax.f32 %v196_v54, 0.0 }
  0xf2   :  { %v263_v62 = vpack.c.bf16 %v255_v56, %v254_v46  ;;  %v253_v63 = vmax.f32 %v228_v57, 0.0  ;;  %v385_v36 = vmul.f32 %v347_v27, %v347_v27 }
  0xf3   :  { %v391_v0 = vadd.f32 %v390_v59, %v376_v52  ;;  %514 = vst [vmem:[%s709_s2 + $0x18] sm:$0xff] %v259_v60   ;;  %v258_v1 = vpack.c.bf16 %v245_v61, %v244_v53  ;;  %v354_v6 = vadd.f32 %v353_v58, %v339_v43  ;;  %v342_v7 = vunpack.c.l.bf16 %v259_v60 }
  0xf4   :  { %518 = vst [vmem:[%s709_s2 + $0x38] sm:$0xff] %v263_v62   ;;  %v262_v2 = vpack.c.bf16 %v253_v63, %v252_v55  ;;  %v343_v11 = vunpack.c.h.bf16 %v259_v60  ;;  %v350_v39 = vunpack.c.l.bf16 %v263_v62  ;;  %v351_v44 = vunpack.c.h.bf16 %v263_v62 }
  0xf5   :  { %513 = vst [vmem:[%s709_s2 + $0x10] sm:$0xff] %v258_v1   ;;  %v340_v4 = vunpack.c.l.bf16 %v258_v1  ;;  %v341_v5 = vunpack.c.h.bf16 %v258_v1  ;;  %v392_v10 = vadd.f32 %v391_v0, %v377_v3  ;;  %v380_v15 = vmul.f32 %v342_v7, %v342_v7 }
  0xf6   :  { %517 = vst [vmem:[%s709_s2 + $0x30] sm:$0xff] %v262_v2   ;;  %v381_v19 = vmul.f32 %v343_v11, %v343_v11  ;;  %v348_v35 = vunpack.c.l.bf16 %v262_v2  ;;  %v349_v38 = vunpack.c.h.bf16 %v262_v2  ;;  %v388_v32 = vmul.f32 %v350_v39, %v350_v39 }
  0xf7   :  { %v355_v8 = vadd.f32 %v354_v6, %v340_v4  ;;  %v378_v9 = vmul.f32 %v340_v4, %v340_v4  ;;  %v379_v13 = vmul.f32 %v341_v5, %v341_v5  ;;  %v389_v50 = vmul.f32 %v351_v44, %v351_v44 }
  0xf8   :  { %v386_v42 = vmul.f32 %v348_v35, %v348_v35  ;;  %v387_v46 = vmul.f32 %v349_v38, %v349_v38 }
  0xf9   :  { %v356_v12 = vadd.f32 %v355_v8, %v341_v5  ;;  %v393_v14 = vadd.f32 %v392_v10, %v378_v9 }
  0xfb   :  { %v357_v16 = vadd.f32 %v356_v12, %v342_v7  ;;  %v394_v17 = vadd.f32 %v393_v14, %v379_v13 }
  0xfd   :  { %v395_v20 = vadd.f32 %v394_v17, %v380_v15  ;;  %v358_v22 = vadd.f32 %v357_v16, %v343_v11 }
  0xff   :  { %v359_v24 = vadd.f32 %v358_v22, %v344_v18  ;;  %v396_v26 = vadd.f32 %v395_v20, %v381_v19 }
 0x101   :  { %v360_v28 = vadd.f32 %v359_v24, %v345_v21  ;;  %v397_v30 = vadd.f32 %v396_v26, %v382_v25 }
 0x103   :  { %v361_v33 = vadd.f32 %v360_v28, %v346_v23  ;;  %v398_v34 = vadd.f32 %v397_v30, %v383_v29 }
 0x105   :  { %v399_v37 = vadd.f32 %v398_v34, %v384_v31  ;;  %v362_v40 = vadd.f32 %v361_v33, %v347_v27 }
 0x107   :  { %v363_v41 = vadd.f32 %v362_v40, %v348_v35  ;;  %v400_v43 = vadd.f32 %v399_v37, %v385_v36 }
 0x109   :  { %v364_v45 = vadd.f32 %v363_v41, %v349_v38  ;;  %v401_v47 = vadd.f32 %v400_v43, %v386_v42 }
 0x10b   :  { %v365_v48 = vadd.f32 %v364_v45, %v350_v39  ;;  %v402_v49 = vadd.f32 %v401_v47, %v387_v46 }
 0x10d   :  { %v366_v51 = vadd.f32 %v365_v48, %v351_v44  ;;  %v403_v52 = vadd.f32 %v402_v49, %v388_v32 }
 0x10f   :  { %v367_v53 = vrot.slane %v366_v51, 4  ;;  %v404_v54 = vadd.f32 %v403_v52, %v389_v50 }
 0x111   :  { %v368_v55 = vadd.f32 %v367_v53, %v366_v51  ;;  %v405_v56 = vrot.slane %v404_v54, 4 }
 0x113   :  { %v369_v57 = vrot.slane %v368_v55, 2  ;;  %v406_v58 = vadd.f32 %v405_v56, %v404_v54 }
 0x115   :  { %v370_v59 = vadd.f32 %v369_v57, %v368_v55  ;;  %v407_v60 = vrot.slane %v406_v58, 2 }
 0x117   :  { %v371_v61 = vrot.slane %v370_v59, 1  ;;  %v408_v63 = vadd.f32 %v407_v60, %v406_v58 }
 0x119   :  { %v372_v62 = vadd.f32 %v371_v61, %v370_v59  ;;  %v409_v0 = vrot.slane %v408_v63, 1 }
 0x11b   :  { %373 = vst [vmem:[%s710_s3] sm:$0x1] %v372_v62  ;;  %v410_v1 = vadd.f32 %v409_v0, %v408_v63 }
 0x11d   :  { %411 = vst [vmem:[%s711_s4] sm:$0x1] %v410_v1 }

</bundles_post_ra>
